<compile_context>
chip_gen: v7x
topology: tpu7x:2x2x1
jax: 0.10.0
libtpu: 0.0.40
codegen_flags: <defaults>
</compile_context>

<pallas_src>
import functools
import numpy as np
import jax
import jax.numpy as jnp
from jax.experimental import pallas as pl
from jax.experimental.pallas import tpu as pltpu

# ----------------------------------------------------------------------------
# Module-consistent hyper-parameters
# ----------------------------------------------------------------------------
B    = 2      # test batch (real samples)
CIN  = 1      # feature_size (must be 1: default fc head has 6 + 1 = 7 inputs)
SNPS = 256    # snps_number (raw input has SNPS+1 time steps; last one is the year)
C1   = 8      # out_channel_1
C2   = 8      # out_channel_2
K1   = 4      # kernel_size_1 (conv1 stride == K1, maxpool1 kernel == K1)
K2   = 2      # kernel_size_2 (conv2 stride == K2, maxpool2 kernel == K2)
MPS  = 2      # max_pooling_stride
VEC  = 6      # self.vector_length
OUT  = 2      # output_size

L1 = (SNPS - K1) // K1 + 1        # conv1 out length    = 64
P1 = (L1 - K1) // MPS + 1         # maxpool1 out length = 31
L2 = (P1 - K2) // K2 + 1          # conv2 out length    = 15
P2 = (L2 - K2) // MPS + 1         # maxpool2 out length = 7

BP        = 8                     # padded batch rows per grid tile (row = c*BP + b)
OUT_LANES = BP                    # packed output lanes: [cluster(VEC), r, y_max, 0-pad]
YEAR_ROW0 = K1 * BP               # first row of the 8-row block holding the year scalars
XROWS     = K1 * BP + 8           # deinterleaved conv1 windows + one 8-row year block

assert K2 == MPS, "selector-prefix sharing assumes conv2 stride == pooling stride"
assert CIN == 1, "year folding / fc layout assume a single input feature channel"
assert VEC + OUT <= OUT_LANES and OUT_LANES == BP and BP % 8 == 0


# ----------------------------------------------------------------------------
# Pallas kernel: whole forward pass on (channel*BP, length) 2-D operands
# ----------------------------------------------------------------------------
def _embed_kernel(x_ref, slab_ref, out_ref, *, off):
    f32 = jnp.float32

    def get(name):                                    # static slab slice (row + lane offsets)
        r0, nr, c0, nc = off[name]
        return slab_ref[r0:r0 + nr, c0:c0 + nc]

    x = x_ref[0:YEAR_ROW0, :]                         # (K1*BP, L1) deinterleaved conv1 windows
    year = x_ref[YEAR_ROW0:YEAR_ROW0 + BP, 0:1]       # (BP, 1)

    # conv1 (stride == kernel): one left matmul with the real weights + bias, LeakyReLU(0.01)
    y1 = jnp.dot(get("w1l"), x, preferred_element_type=f32) + get("b1c")     # (C1*BP, L1)
    y1 = jnp.maximum(y1, 0.01 * y1)

    # one-hot stride-MPS selectors; their prefixes also serve conv2-gather and maxpool2
    s1 = [get(f"s1_{j}") for j in range(K1)]                                 # (L1, P1) each

    # maxpool1 (kernel K1, stride MPS): elementwise max over K1 exact selector matmuls
    p1 = jnp.dot(y1, s1[0], preferred_element_type=f32)                      # (C1*BP, P1)
    for j in range(1, K1):
        p1 = jnp.maximum(p1, jnp.dot(y1, s1[j], preferred_element_type=f32))

    # conv2 (stride == kernel): per-tap channel mix (block-diag over batch rows) + lane gather
    y2 = None
    for j in range(K2):
        t = jnp.dot(get(f"w2l_{j}"), p1, preferred_element_type=f32)         # (C2*BP, P1)
        t = jnp.dot(t, s1[j][0:P1, 0:L2], preferred_element_type=f32)        # (C2*BP, L2)
        y2 = t if y2 is None else y2 + t
    y2 = y2 + get("b2c")
    y2 = jnp.maximum(y2, 0.01 * y2)

    # maxpool2 (kernel K2, stride MPS)
    p2 = jnp.dot(y2, s1[0][0:L2, 0:P2], preferred_element_type=f32)          # (C2*BP, P2)
    for j in range(1, K2):
        p2 = jnp.maximum(p2, jnp.dot(y2, s1[j][0:L2, 0:P2], preferred_element_type=f32))

    # cluster Linear (torch flatten order c*P2 + p): one matmul against the lane-concatenated
    # weight, then an 8x8-aligned block-diagonal extraction summed on the VPU.
    z = jnp.dot(p2, get("wc_cat"), preferred_element_type=f32)               # (C2*BP, C2*BP)
    cl = z[0:BP, 0:BP]
    for c in range(1, C2):
        cl = cl + z[c * BP:(c + 1) * BP, c * BP:(c + 1) * BP]
    cluster = cl + get("bc")                                 # (BP, BP); lanes >= VEC are zero

    # fc head pre-placed in lanes VEC (r) and VEC+1 (y_max); year enters as a broadcast multiply
    fc8 = (jnp.dot(cluster, get("wfa"), preferred_element_type=f32)
           + year * get("wfb") + get("bf"))                                  # (BP, BP)
    lane = jax.lax.broadcasted_iota(jnp.int32, fc8.shape, 1)
    head = jnp.where(lane == VEC, jax.nn.sigmoid(fc8),
                     jnp.where(lane == VEC + 1, jnp.tanh(fc8) + 1.0, 0.0))

    # single full-tile store: [cluster | r | y_max | 0-pad]
    out_ref[...] = cluster + head


def embedding_forward_pallas(x_in, slab, off, *, batch):
    nb = x_in.shape[0]
    kernel = functools.partial(_embed_kernel, off=off)
    out = pl.pallas_call(
        kernel,
        out_shape=jax.ShapeDtypeStruct((nb, BP, OUT_LANES), jnp.float32),
        grid=(nb,),
        in_specs=[
            pl.BlockSpec((None, XROWS, L1), lambda i: (i, 0, 0)),
            pl.BlockSpec(slab.shape, lambda i: (0, 0)),      # slab stays VMEM-resident
        ],
        out_specs=pl.BlockSpec((None, BP, OUT_LANES), lambda i: (i, 0, 0)),
        compiler_params=pltpu.CompilerParams(dimension_semantics=("parallel",)),
    )(x_in, slab)
    flat = out.reshape(nb * BP, OUT_LANES)[:batch]           # row g == sample g (tile-major)
    return flat[:, :VEC], flat[:, VEC], flat[:, VEC + 1]


# ----------------------------------------------------------------------------
# Host-side glue: packed constant slab + input layout (numpy only, no checkpoints)
# ----------------------------------------------------------------------------
def _pack_slab(consts, lane_width=128, row_align=8, lane_align=8):
    """Shelf-pack 2-D constant blocks into one lane-dense (rows, 128) f32 slab."""
    off, shelves, nrows = {}, [], 0
    for name, a in consts.items():
        nr, nc = a.shape
        h = -(-nr // row_align) * row_align
        w = -(-nc // lane_align) * lane_align
        assert w <= lane_width, name
        spot = None
        for sh in shelves:                                   # sh = [row0, height, used_lanes]
            if h <= sh[1] and sh[2] + w <= lane_width:
                spot = (sh[0], sh[2])
                sh[2] += w
                break
        if spot is None:
            spot = (nrows, 0)
            shelves.append([nrows, h, w])
            nrows += h
        off[name] = (spot[0], nr, spot[1], nc)
    slab = np.zeros((nrows, lane_width), np.float32)
    for name, a in consts.items():
        r0, nr, c0, nc = off[name]
        slab[r0:r0 + nr, c0:c0 + nc] = a
    return slab, off


def build_constants(w1, b1, w2, b2, wc, bc, wf, bf):
    consts = {}

    # maxpool1 one-hot selectors s1_j[r, p] = 1 iff r == p*MPS + j (shape (L1, P1)).
    # Their (P1, L2) / (L2, P2) prefixes are exactly the conv2-gather / maxpool2 selectors.
    for j in range(K1):
        s = np.zeros((L1, P1), np.float32)
        for p in range(P1):
            s[p * MPS + j, p] = 1.0
        consts[f"s1_{j}"] = s

    # conv1 as a left matmul on rows (j*BP + b) -> (c*BP + b)
    w1l = np.zeros((C1 * BP, K1 * BP), np.float32)
    b1c = np.zeros((C1 * BP, 1), np.float32)
    for c in range(C1):
        b1c[c * BP:(c + 1) * BP, 0] = b1[c]
        for j in range(K1):
            for b_ in range(BP):
                w1l[c * BP + b_, j * BP + b_] = w1[c, 0, j]
    consts["w1l"], consts["b1c"] = w1l, b1c

    # conv2: per-tap channel mixing, block-diagonal over the padded batch rows
    for j in range(K2):
        wl = np.zeros((C2 * BP, C1 * BP), np.float32)
        for co in range(C2):
            for ci in range(C1):
                for b_ in range(BP):
                    wl[co * BP + b_, ci * BP + b_] = w2[co, ci, j]
        consts[f"w2l_{j}"] = wl
    b2c = np.zeros((C2 * BP, 1), np.float32)
    for co in range(C2):
        b2c[co * BP:(co + 1) * BP, 0] = b2[co]
    consts["b2c"] = b2c

    # cluster Linear: lane-concatenated weight, one BP-lane block per channel (lanes >= VEC zero)
    wc_cat = np.zeros((P2, C2 * BP), np.float32)
    for c in range(C2):
        for v in range(VEC):
            for p in range(P2):
                wc_cat[p, c * BP + v] = wc[v, c * P2 + p]
    consts["wc_cat"] = wc_cat
    bc8 = np.zeros((1, BP), np.float32)
    bc8[0, :VEC] = bc
    consts["bc"] = bc8

    # fc head, pre-placed in output lanes VEC..VEC+OUT-1
    wfa = np.zeros((BP, OUT_LANES), np.float32)
    wfb = np.zeros((1, OUT_LANES), np.float32)
    bf8 = np.zeros((1, OUT_LANES), np.float32)
    for o in range(OUT):
        wfa[:VEC, VEC + o] = wf[o, :VEC]
        wfb[0, VEC + o] = wf[o, VEC]
        bf8[0, VEC + o] = bf[o]
    consts["wfa"], consts["wfb"], consts["bf"] = wfa, wfb, bf8

    return _pack_slab(consts)


def pack_inputs(xn):
    """Deinterleave conv1 windows into rows (j*BP + b) and fold the year scalar into an extra
    8-row block of the same tile (one input DMA per grid step)."""
    batch = xn.shape[0]
    nb = -(-batch // BP)
    x_np = np.zeros((nb, XROWS, L1), np.float32)
    for g in range(batch):
        t, b_ = divmod(g, BP)
        for j in range(K1):
            x_np[t, j * BP + b_, :] = xn[g, 0, j:SNPS:K1]    # x[g, 0, l*K1 + j]
        x_np[t, YEAR_ROW0 + b_, 0] = xn[g, 0, SNPS]          # year_encode = last time step
    return jnp.asarray(x_np)


# ----------------------------------------------------------------------------
# Numpy reference of the PyTorch forward (for correctness check)
# ----------------------------------------------------------------------------
def ref_forward_np(x, w1, b1, w2, b2, wc, bc, wf, bf):
    year = x[:, :, -1]
    xi = x[:, :, :-1]

    def conv1d(xx, w, b, stride):
        bb, cin, ll = xx.shape
        cout, _, k = w.shape
        lout = (ll - k) // stride + 1
        out = np.zeros((bb, cout, lout), np.float32)
        for l in range(lout):
            patch = xx[:, :, l * stride:l * stride + k]
            out[:, :, l] = np.tensordot(patch, w, axes=([1, 2], [1, 2])) + b
        return out

    def leaky(v):
        return np.where(v > 0, v, 0.01 * v)

    def maxpool(xx, k, s):
        bb, c, ll = xx.shape
        lout = (ll - k) // s + 1
        out = np.zeros((bb, c, lout), np.float32)
        for p in range(lout):
            out[:, :, p] = xx[:, :, p * s:p * s + k].max(axis=-1)
        return out

    y = maxpool(leaky(conv1d(xi, w1, b1, K1)), K1, MPS)
    y = maxpool(leaky(conv1d(y, w2, b2, K2)), K2, MPS)
    flat = y.reshape(y.shape[0], -1)
    cluster = flat @ wc.T + bc
    pin = np.concatenate([cluster, year], axis=-1)
    out_fc = pin @ wf.T + bf
    r = 1.0 / (1.0 + np.exp(-out_fc[:, 0]))
    ymax = np.tanh(out_fc[:, 1]) + 1.0
    return cluster, r, ymax


# ----------------------------------------------------------------------------
if __name__ == "__main__":
    key = jax.random.PRNGKey(0)
    k_in, k1w, k1b, k2w, k2b, kcw, kcb, kfw, kfb = jax.random.split(key, 9)

    # deterministic synthetic parameters (xavier-ish scale; no checkpoint loading)
    inputx = jax.random.normal(k_in, (B, CIN, SNPS + 1), jnp.float32)
    w1 = 0.3 * jax.random.normal(k1w, (C1, CIN, K1), jnp.float32)
    b1 = 0.1 * jax.random.normal(k1b, (C1,), jnp.float32)
    w2 = 0.3 * jax.random.normal(k2w, (C2, C1, K2), jnp.float32)
    b2 = 0.1 * jax.random.normal(k2b, (C2,), jnp.float32)
    wc = 0.3 * jax.random.normal(kcw, (VEC, C2 * P2), jnp.float32)
    bc = 0.1 * jax.random.normal(kcb, (VEC,), jnp.float32)
    wf = 0.3 * jax.random.normal(kfw, (OUT, VEC + CIN), jnp.float32)
    bf = 0.1 * jax.random.normal(kfb, (OUT,), jnp.float32)

    w1n, b1n = np.asarray(w1), np.asarray(b1)
    w2n, b2n = np.asarray(w2), np.asarray(b2)
    wcn, bcn = np.asarray(wc), np.asarray(bc)
    wfn, bfn = np.asarray(wf), np.asarray(bf)
    xn = np.asarray(inputx)

    # one lane-dense packed constant slab + static offsets; packed/padded input tiles
    slab_np, off = build_constants(w1n, b1n, w2n, b2n, wcn, bcn, wfn, bfn)
    slab = jnp.asarray(slab_np)
    x_in = pack_inputs(xn)

    cluster, r, ymax = embedding_forward_pallas(x_in, slab, off, batch=B)
    jax.block_until_ready((cluster, r, ymax))

    # correctness check against a straightforward numpy reference (tightened tolerance)
    cluster_ref, r_ref, ymax_ref = ref_forward_np(xn, w1n, b1n, w2n, b2n, wcn, bcn, wfn, bfn)
    assert np.allclose(np.asarray(cluster), cluster_ref, rtol=1e-4, atol=1e-4)
    assert np.allclose(np.asarray(r), r_ref, rtol=1e-4, atol=1e-4)
    assert np.allclose(np.asarray(ymax), ymax_ref, rtol=1e-4, atol=1e-4)

    print("KERNEL_OK")
</pallas_src>

<mosaic_0001>
module attributes {stable_mosaic.version = 11 : i64} {
  func.func @_embed_kernel(%arg0: i32, %arg1: memref<1x40x64xf32, #tpu.memory_space<vmem>>, %arg2: memref<200x128xf32, #tpu.memory_space<vmem>>, %arg3: memref<1x8x8xf32, #tpu.memory_space<vmem>>) attributes {dimension_semantics = [#tpu.dimension_semantics<parallel>], iteration_bounds = array<i64: 1>, scalar_prefetch = 0 : i64, scratch_operands = 0 : i64, tpu.core_type = #tpu.core_type<tc>, window_params = [{transform_indices = @transform_0, window_bounds = array<i64: 1, 40, 64>}, {pipeline_mode = #tpu.pipeline_mode<synchronous>, transform_indices = @transform_1, window_bounds = array<i64: 200, 128>}, {transform_indices = @transform_2, window_bounds = array<i64: 1, 8, 8>}]} {
    %c0 = arith.constant 0 : index
    %c0_0 = arith.constant 0 : index
    %c0_1 = arith.constant 0 : index
    %0 = vector.load %arg1[%c0, %c0_0, %c0_1] : memref<1x40x64xf32, #tpu.memory_space<vmem>>, vector<1x32x64xf32>
    %1 = vector.shape_cast %0 : vector<1x32x64xf32> to vector<32x64xf32>
    %c0_2 = arith.constant 0 : index
    %c32 = arith.constant 32 : index
    %c0_3 = arith.constant 0 : index
    %2 = vector.load %arg1[%c0_2, %c32, %c0_3] : memref<1x40x64xf32, #tpu.memory_space<vmem>>, vector<1x8x1xf32>
    %3 = vector.shape_cast %2 : vector<1x8x1xf32> to vector<8x1xf32>
    %c64 = arith.constant 64 : index
    %c0_4 = arith.constant 0 : index
    %4 = vector.load %arg2[%c64, %c0_4] : memref<200x128xf32, #tpu.memory_space<vmem>>, vector<64x32xf32>
    %cst = arith.constant dense<0.000000e+00> : vector<64x64xf32>
    %5 = tpu.matmul %4, %1, %cst {dimension_numbers = #tpu.dot_dimension_numbers<[1], [0], [0], [1], [0, 0, 1, 1], [], []>} : vector<64x32xf32>, vector<32x64xf32>, vector<64x64xf32> -> vector<64x64xf32>
    %c64_5 = arith.constant 64 : index
    %c32_6 = arith.constant 32 : index
    %6 = vector.load %arg2[%c64_5, %c32_6] : memref<200x128xf32, #tpu.memory_space<vmem>>, vector<64x1xf32>
    %7 = vector.broadcast %6 : vector<64x1xf32> to vector<64x64xf32>
    %8 = arith.addf %5, %7 : vector<64x64xf32>
    %cst_7 = arith.constant 0.00999999977 : f32
    %9 = vector.broadcast %cst_7 : f32 to vector<64x64xf32>
    %10 = arith.mulf %9, %8 : vector<64x64xf32>
    %11 = arith.maximumf %8, %10 : vector<64x64xf32>
    %c0_8 = arith.constant 0 : index
    %c0_9 = arith.constant 0 : index
    %12 = vector.load %arg2[%c0_8, %c0_9] : memref<200x128xf32, #tpu.memory_space<vmem>>, vector<64x31xf32>
    %c0_10 = arith.constant 0 : index
    %c32_11 = arith.constant 32 : index
    %13 = vector.load %arg2[%c0_10, %c32_11] : memref<200x128xf32, #tpu.memory_space<vmem>>, vector<64x31xf32>
    %c0_12 = arith.constant 0 : index
    %c64_13 = arith.constant 64 : index
    %14 = vector.load %arg2[%c0_12, %c64_13] : memref<200x128xf32, #tpu.memory_space<vmem>>, vector<64x31xf32>
    %c0_14 = arith.constant 0 : index
    %c96 = arith.constant 96 : index
    %15 = vector.load %arg2[%c0_14, %c96] : memref<200x128xf32, #tpu.memory_space<vmem>>, vector<64x31xf32>
    %cst_15 = arith.constant dense<0.000000e+00> : vector<64x31xf32>
    %16 = tpu.matmul %11, %12, %cst_15 {dimension_numbers = #tpu.dot_dimension_numbers<[1], [0], [0], [1], [0, 0, 1, 1], [], []>} : vector<64x64xf32>, vector<64x31xf32>, vector<64x31xf32> -> vector<64x31xf32>
    %cst_16 = arith.constant dense<0.000000e+00> : vector<64x31xf32>
    %17 = tpu.matmul %11, %13, %cst_16 {dimension_numbers = #tpu.dot_dimension_numbers<[1], [0], [0], [1], [0, 0, 1, 1], [], []>} : vector<64x64xf32>, vector<64x31xf32>, vector<64x31xf32> -> vector<64x31xf32>
    %18 = arith.maximumf %16, %17 : vector<64x31xf32>
    %cst_17 = arith.constant dense<0.000000e+00> : vector<64x31xf32>
    %19 = tpu.matmul %11, %14, %cst_17 {dimension_numbers = #tpu.dot_dimension_numbers<[1], [0], [0], [1], [0, 0, 1, 1], [], []>} : vector<64x64xf32>, vector<64x31xf32>, vector<64x31xf32> -> vector<64x31xf32>
    %20 = arith.maximumf %18, %19 : vector<64x31xf32>
    %cst_18 = arith.constant dense<0.000000e+00> : vector<64x31xf32>
    %21 = tpu.matmul %11, %15, %cst_18 {dimension_numbers = #tpu.dot_dimension_numbers<[1], [0], [0], [1], [0, 0, 1, 1], [], []>} : vector<64x64xf32>, vector<64x31xf32>, vector<64x31xf32> -> vector<64x31xf32>
    %22 = arith.maximumf %20, %21 : vector<64x31xf32>
    %c64_19 = arith.constant 64 : index
    %c40 = arith.constant 40 : index
    %23 = vector.load %arg2[%c64_19, %c40] : memref<200x128xf32, #tpu.memory_space<vmem>>, vector<64x64xf32>
    %cst_20 = arith.constant dense<0.000000e+00> : vector<64x31xf32>
    %24 = tpu.matmul %23, %22, %cst_20 {dimension_numbers = #tpu.dot_dimension_numbers<[1], [0], [0], [1], [0, 0, 1, 1], [], []>} : vector<64x64xf32>, vector<64x31xf32>, vector<64x31xf32> -> vector<64x31xf32>
    %25 = vector.extract_strided_slice %12 {offsets = [0, 0], sizes = [31, 15], strides = [1, 1]} : vector<64x31xf32> to vector<31x15xf32>
    %cst_21 = arith.constant dense<0.000000e+00> : vector<64x15xf32>
    %26 = tpu.matmul %24, %25, %cst_21 {dimension_numbers = #tpu.dot_dimension_numbers<[1], [0], [0], [1], [0, 0, 1, 1], [], []>} : vector<64x31xf32>, vector<31x15xf32>, vector<64x15xf32> -> vector<64x15xf32>
    %c128 = arith.constant 128 : index
    %c0_22 = arith.constant 0 : index
    %27 = vector.load %arg2[%c128, %c0_22] : memref<200x128xf32, #tpu.memory_space<vmem>>, vector<64x64xf32>
    %cst_23 = arith.constant dense<0.000000e+00> : vector<64x31xf32>
    %28 = tpu.matmul %27, %22, %cst_23 {dimension_numbers = #tpu.dot_dimension_numbers<[1], [0], [0], [1], [0, 0, 1, 1], [], []>} : vector<64x64xf32>, vector<64x31xf32>, vector<64x31xf32> -> vector<64x31xf32>
    %29 = vector.extract_strided_slice %13 {offsets = [0, 0], sizes = [31, 15], strides = [1, 1]} : vector<64x31xf32> to vector<31x15xf32>
    %cst_24 = arith.constant dense<0.000000e+00> : vector<64x15xf32>
    %30 = tpu.matmul %28, %29, %cst_24 {dimension_numbers = #tpu.dot_dimension_numbers<[1], [0], [0], [1], [0, 0, 1, 1], [], []>} : vector<64x31xf32>, vector<31x15xf32>, vector<64x15xf32> -> vector<64x15xf32>
    %31 = arith.addf %26, %30 : vector<64x15xf32>
    %c64_25 = arith.constant 64 : index
    %c104 = arith.constant 104 : index
    %32 = vector.load %arg2[%c64_25, %c104] : memref<200x128xf32, #tpu.memory_space<vmem>>, vector<64x1xf32>
    %33 = vector.broadcast %32 : vector<64x1xf32> to vector<64x15xf32>
    %34 = arith.addf %31, %33 : vector<64x15xf32>
    %cst_26 = arith.constant 0.00999999977 : f32
    %35 = vector.broadcast %cst_26 : f32 to vector<64x15xf32>
    %36 = arith.mulf %35, %34 : vector<64x15xf32>
    %37 = arith.maximumf %34, %36 : vector<64x15xf32>
    %38 = vector.extract_strided_slice %12 {offsets = [0, 0], sizes = [15, 7], strides = [1, 1]} : vector<64x31xf32> to vector<15x7xf32>
    %cst_27 = arith.constant dense<0.000000e+00> : vector<64x7xf32>
    %39 = tpu.matmul %37, %38, %cst_27 {dimension_numbers = #tpu.dot_dimension_numbers<[1], [0], [0], [1], [0, 0, 1, 1], [], []>} : vector<64x15xf32>, vector<15x7xf32>, vector<64x7xf32> -> vector<64x7xf32>
    %40 = vector.extract_strided_slice %13 {offsets = [0, 0], sizes = [15, 7], strides = [1, 1]} : vector<64x31xf32> to vector<15x7xf32>
    %cst_28 = arith.constant dense<0.000000e+00> : vector<64x7xf32>
    %41 = tpu.matmul %37, %40, %cst_28 {dimension_numbers = #tpu.dot_dimension_numbers<[1], [0], [0], [1], [0, 0, 1, 1], [], []>} : vector<64x15xf32>, vector<15x7xf32>, vector<64x7xf32> -> vector<64x7xf32>
    %42 = arith.maximumf %39, %41 : vector<64x7xf32>
    %c128_29 = arith.constant 128 : index
    %c64_30 = arith.constant 64 : index
    %43 = vector.load %arg2[%c128_29, %c64_30] : memref<200x128xf32, #tpu.memory_space<vmem>>, vector<7x64xf32>
    %cst_31 = arith.constant dense<0.000000e+00> : vector<64x64xf32>
    %44 = tpu.matmul %42, %43, %cst_31 {dimension_numbers = #tpu.dot_dimension_numbers<[1], [0], [0], [1], [0, 0, 1, 1], [], []>} : vector<64x7xf32>, vector<7x64xf32>, vector<64x64xf32> -> vector<64x64xf32>
    %45 = vector.extract_strided_slice %44 {offsets = [0, 0], sizes = [8, 8], strides = [1, 1]} : vector<64x64xf32> to vector<8x8xf32>
    %46 = vector.extract_strided_slice %44 {offsets = [8, 8], sizes = [8, 8], strides = [1, 1]} : vector<64x64xf32> to vector<8x8xf32>
    %47 = arith.addf %45, %46 : vector<8x8xf32>
    %48 = vector.extract_strided_slice %44 {offsets = [16, 16], sizes = [8, 8], strides = [1, 1]} : vector<64x64xf32> to vector<8x8xf32>
    %49 = arith.addf %47, %48 : vector<8x8xf32>
    %50 = vector.extract_strided_slice %44 {offsets = [24, 24], sizes = [8, 8], strides = [1, 1]} : vector<64x64xf32> to vector<8x8xf32>
    %51 = arith.addf %49, %50 : vector<8x8xf32>
    %52 = vector.extract_strided_slice %44 {offsets = [32, 32], sizes = [8, 8], strides = [1, 1]} : vector<64x64xf32> to vector<8x8xf32>
    %53 = arith.addf %51, %52 : vector<8x8xf32>
    %54 = vector.extract_strided_slice %44 {offsets = [40, 40], sizes = [8, 8], strides = [1, 1]} : vector<64x64xf32> to vector<8x8xf32>
    %55 = arith.addf %53, %54 : vector<8x8xf32>
    %56 = vector.extract_strided_slice %44 {offsets = [48, 48], sizes = [8, 8], strides = [1, 1]} : vector<64x64xf32> to vector<8x8xf32>
    %57 = arith.addf %55, %56 : vector<8x8xf32>
    %58 = vector.extract_strided_slice %44 {offsets = [56, 56], sizes = [8, 8], strides = [1, 1]} : vector<64x64xf32> to vector<8x8xf32>
    %59 = arith.addf %57, %58 : vector<8x8xf32>
    %c64_32 = arith.constant 64 : index
    %c112 = arith.constant 112 : index
    %60 = vector.load %arg2[%c64_32, %c112] : memref<200x128xf32, #tpu.memory_space<vmem>>, vector<1x8xf32>
    %61 = vector.broadcast %60 : vector<1x8xf32> to vector<8x8xf32>
    %62 = arith.addf %59, %61 : vector<8x8xf32>
    %c64_33 = arith.constant 64 : index
    %c120 = arith.constant 120 : index
    %63 = vector.load %arg2[%c64_33, %c120] : memref<200x128xf32, #tpu.memory_space<vmem>>, vector<8x8xf32>
    %cst_34 = arith.constant dense<0.000000e+00> : vector<8x8xf32>
    %64 = tpu.matmul %62, %63, %cst_34 {dimension_numbers = #tpu.dot_dimension_numbers<[1], [0], [0], [1], [0, 0, 1, 1], [], []>} : vector<8x8xf32>, vector<8x8xf32>, vector<8x8xf32> -> vector<8x8xf32>
    %c192 = arith.constant 192 : index
    %c0_35 = arith.constant 0 : index
    %65 = vector.load %arg2[%c192, %c0_35] : memref<200x128xf32, #tpu.memory_space<vmem>>, vector<1x8xf32>
    %66 = vector.broadcast %3 : vector<8x1xf32> to vector<8x8xf32>
    %67 = vector.broadcast %65 : vector<1x8xf32> to vector<8x8xf32>
    %68 = arith.mulf %66, %67 : vector<8x8xf32>
    %69 = arith.addf %64, %68 : vector<8x8xf32>
    %c192_36 = arith.constant 192 : index
    %c8 = arith.constant 8 : index
    %70 = vector.load %arg2[%c192_36, %c8] : memref<200x128xf32, #tpu.memory_space<vmem>>, vector<1x8xf32>
    %71 = vector.broadcast %70 : vector<1x8xf32> to vector<8x8xf32>
    %72 = arith.addf %69, %71 : vector<8x8xf32>
    %73 = tpu.iota {dimensions = array<i32: 1>} : vector<8x8xi32>
    %c6_i32 = arith.constant 6 : i32
    %74 = vector.broadcast %c6_i32 : i32 to vector<8x8xi32>
    %75 = arith.cmpi eq, %73, %74 : vector<8x8xi32>
    %76 = arith.negf %72 : vector<8x8xf32>
    %77 = math.exp %76 : vector<8x8xf32>
    %cst_37 = arith.constant 1.000000e+00 : f32
    %78 = vector.broadcast %cst_37 : f32 to vector<8x8xf32>
    %79 = arith.addf %78, %77 : vector<8x8xf32>
    %80 = arith.divf %78, %79 : vector<8x8xf32>
    %c7_i32 = arith.constant 7 : i32
    %81 = vector.broadcast %c7_i32 : i32 to vector<8x8xi32>
    %82 = arith.cmpi eq, %73, %81 : vector<8x8xi32>
    %83 = math.tanh %72 : vector<8x8xf32>
    %cst_38 = arith.constant 1.000000e+00 : f32
    %84 = vector.broadcast %cst_38 : f32 to vector<8x8xf32>
    %85 = arith.addf %83, %84 : vector<8x8xf32>
    %cst_39 = arith.constant 0.000000e+00 : f32
    %86 = vector.broadcast %cst_39 : f32 to vector<8x8xf32>
    %87 = arith.select %82, %85, %86 : vector<8x8xi1>, vector<8x8xf32>
    %88 = arith.select %75, %80, %87 : vector<8x8xi1>, vector<8x8xf32>
    %89 = arith.addf %62, %88 : vector<8x8xf32>
    %c0_40 = arith.constant 0 : index
    %c0_41 = arith.constant 0 : index
    %c0_42 = arith.constant 0 : index
    %90 = vector.load %arg3[%c0_40, %c0_41, %c0_42] : memref<1x8x8xf32, #tpu.memory_space<vmem>>, vector<1x8x8xf32>
    %91 = vector.shape_cast %90 : vector<1x8x8xf32> to vector<8x8xf32>
    %92 = vector.shape_cast %89 : vector<8x8xf32> to vector<1x8x8xf32>
    tpu.vector_store %arg3[%c0_40, %c0_41, %c0_42], %92 {strides = array<i32>} : memref<1x8x8xf32, #tpu.memory_space<vmem>>, vector<1x8x8xf32>,
    return
  }
  func.func @transform_0(%arg0: i32) -> (i32, i32, i32) {
    %c0_i32 = arith.constant 0 : i32
    %c0_i32_0 = arith.constant 0 : i32
    %c0_i32_1 = arith.constant 0 : i32
    return %arg0, %c0_i32, %c0_i32_0 : i32, i32, i32
  }
  func.func @transform_1(%arg0: i32) -> (i32, i32) {
    %c0_i32 = arith.constant 0 : i32
    %c0_i32_0 = arith.constant 0 : i32
    %c0_i32_1 = arith.constant 0 : i32
    return %c0_i32, %c0_i32_0 : i32, i32
  }
  func.func @transform_2(%arg0: i32) -> (i32, i32, i32) {
    %c0_i32 = arith.constant 0 : i32
    %c0_i32_0 = arith.constant 0 : i32
    %c0_i32_1 = arith.constant 0 : i32
    return %arg0, %c0_i32, %c0_i32_0 : i32, i32, i32
  }
}

</mosaic_0001>

<bundles_post_ra>
// kernel: tpu_custom_call.1
= control target key start
LH: loop header
LB: loop body
LE: loop exit
PB: predicated region body
PF: predicated region fallthrough
CT: control target
= control target key end

     0   :  { %7 = vsyncpa [#allocation3], 0  ;;  %s3101_s0 = inlined_call_operand.hbm [shape: f32[1,40,64], index: 0, kind: input, shape index: {}]   ;;  %s3102_s1 = inlined_call_operand.hbm [shape: f32[200,128], index: 1, kind: input, shape index: {}]   ;;  %s3103_s2 = inlined_call_operand.hbm [shape: f32[1,8,8], index: 2, kind: output, shape index: {}]  }
   0x1   :  { %8 = vsyncpa [#allocation6], 0 }
   0x2   :  { %9 = vsyncpa [#allocation4], 0  ;;  %s2793_s9 = smov [#allocation2]   ;;  %s2721_s13 = scalar_lea.hbm %s3101_s0, 640 }
   0x3   :  { %s15_s10 = sshll.u32 %s2793_s9, 4  ;;  %p2722_p0 = scmp.ne.s32.totalorder %s3101_s0, %s2721_s13  ;;  %s16_s10 = int_to_ptr.vmem [resolvable:$true] %s15_s10 }
   0x4   :  { %p2725_p1 = scmp.lt.u32.totalorder %s2721_s13, %s3101_s0 }
   0x6   :  { %p2727_p2 = pnand %p2725_p1, %p2722_p0 }
   0x8   :  { %2730 = shalt.err (!%p2727_p2)
}
   0x9   :  { %s2731_s18 = scalar_lea.vmem %s16_s10, 640  ;;  %p2736_p4 = scmp.lt.s32.totalorder %s16_s10, %s16_s10 }
   0xa   :  { %p2732_p3 = scmp.ne.s32.totalorder %s16_s10, %s2731_s18  ;;  %p2737_p5 = scmp.lt.s32.totalorder %s2731_s18, %s2731_s18 }
   0xc   :  { %p2738_p6 = por %p2737_p5, %p2736_p4 }
   0xe   :  { %p2739_p7 = pnand %p2738_p6, %p2732_p3 }
  0x10   :  { %2742 = shalt.err (!%p2739_p7)
}
  0x11   :  { %s2794_s19 = smov 128   ;;  %s2795_s20 = smov 8  }
  0x12   :  { %21 = dma.hbm_to_vmem [thread:$0]  %s3101_s0, 640, %s16_s10, [#allocation3], %s2794_s19, %s2794_s19, %s2795_s20  }
  0x13   :  { %s2796_s23 = smov [#allocation5]   ;;  %s2743_s27 = scalar_lea.hbm %s3102_s1, 3200 }
  0x14   :  { %s27_s24 = sshll.u32 %s2796_s23, 4  ;;  %p2744_p8 = scmp.ne.s32.totalorder %s3102_s1, %s2743_s27  ;;  %s28_s24 = int_to_ptr.vmem [resolvable:$true] %s27_s24 }
  0x15   :  { %p2747_p9 = scmp.lt.u32.totalorder %s2743_s27, %s3102_s1 }
  0x17   :  { %p2749_p10 = pnand %p2747_p9, %p2744_p8 }
  0x19   :  { %2752 = shalt.err (!%p2749_p10)
}
  0x1a   :  { %s2753_s4 = scalar_lea.vmem %s28_s24, 3200  ;;  %p2758_p12 = scmp.lt.s32.totalorder %s28_s24, %s28_s24 }
  0x1b   :  { %p2754_p11 = scmp.ne.s32.totalorder %s28_s24, %s2753_s4  ;;  %p2759_p13 = scmp.lt.s32.totalorder %s2753_s4, %s2753_s4 }
  0x1d   :  { %p2760_p0 = por %p2759_p13, %p2758_p12 }
  0x1f   :  { %p2761_p1 = pnand %p2760_p0, %p2754_p11 }
  0x21   :  { %2764 = shalt.err (!%p2761_p1)
}
  0x22   :  { %33 = dma.hbm_to_vmem [thread:$0]  %s3102_s1, 3200, %s28_s24, [#allocation6], %s2794_s19, %s2794_s19, %s2795_s20  }
  0x23   :  { %2787 = dma.done.wait [#allocation3], 640  }
  0x24   :  { %2788 = vsyncadd [#allocation3], 4294966656 }
  0x25   :  { %2789 = dma.done.wait [#allocation6], 3200  }
  0x26   :  { %2790 = vsyncadd [#allocation6], 4294964096  ;;  %v2797_v0 = vmov 32   ;;  %vm93_vm0 = vcmask 261120   ;;  %v40_v1 = vld [vmem:[#allocation2] sm:$0xff]  ;;  %v41_v2 = vld [vmem:[#allocation2 + $0x8] sm:$0xff] }
  0x27   :  { %2655 = vset.pattern.permute.xlu1 %v2797_v0  ;;  %2654 = vset.pattern.permute.xlu0 %v2797_v0  ;;  %v42_v3 = vld [vmem:[#allocation2 + $0x10] sm:$0xff]  ;;  %v2484_v4 = vpack.c.bf16 %v41_v2, %v40_v1  ;;  %v43_v5 = vld [vmem:[#allocation2 + $0x18] sm:$0xff]  ;;  %v2855_v6 = vld [vmem:[#allocation5 + $0x40] sm:$0xff]  ;;  %s2798_s1 = smov 96   ;;  %s2799_s6 = smov 64   ;;  %vm239_vm1 = vcmask 523264  }
  0x28   :  { %v2857_v7 = vld [vmem:[#allocation5 + $0x48] sm:$0xff]  ;;  %v2488_v8 = vpack.c.bf16 %v43_v5, %v42_v3  ;;  %2213 = vmatprep.mubr.msk.f32.mxu0 %vm93_vm0, %v2855_v6  ;;  %v233_v9 = vld [vmem:[#allocation5 + $0x10] sm:$0xff]  ;;  %v234_v10 = vld [vmem:[#allocation5 + $0x18] sm:$0xff]  ;;  %s2800_s7 = smov 32   ;;  %s2801_s8 = smov 88   ;;  %vm1087_vm2 = vcmask 1046528  }
  0x29   :  { %60 = vperm.xlu1 %2655, %v2857_v7   ;;  %2485 = vmatprep.subr.bf16.mxu0 %v2484_v4  ;;  %v2656_v11 = vpack.i.bf16 %v234_v10, %v233_v9  ;;  %v231_v12 = vld [vmem:[#allocation5] sm:$0xff]  ;;  %v232_v13 = vld [vmem:[#allocation5 + $0x8] sm:$0xff]  ;;  %v2866_v18 = vld [vmem:[#allocation5 + $0x50] sm:$0xff]  ;;  %v2902_v28 = vpack.c.bf16 %v234_v10, %v233_v9  ;;  %vm2802_vm3 = vmmov 1   ;;  %vm1062_vm5 = vcmask 252928   ;;  %s2804_s9 = smov 120  }
  0x2a   :  { %2487 = vmatpush3.bf16.msra.mxu0 %v2484_v4  ;;  %v2649_v14 = vpack.i.bf16 %v232_v13, %v231_v12  ;;  %v2862_v15 = vpack.c.bf16 %v232_v13, %v231_v12  ;;  %v235_v16 = vld [vmem:[#allocation5 + $0x20] sm:$0xff]  ;;  %v236_v17 = vld [vmem:[#allocation5 + $0x28] sm:$0xff]  ;;  %v2875_v20 = vld [vmem:[#allocation5 + $0x58] sm:$0xff]  ;;  %vm1382_vm6 = vcmask 121856   ;;  %vm1633_vm7 = vcmask 56320   ;;  %s2806_s10 = smov 104  }
  0x2b   :  { %2489 = vmatprep.subr.bf16.mxu0 %v2488_v8  ;;  %v2661_v19 = vpack.i.bf16 %v236_v17, %v235_v16  ;;  %v2878_v21 = vld [vmem:[#allocation5 + $0x60] sm:$0xff]  ;;  %v2885_v22 = vld [vmem:[#allocation5 + $0x68] sm:$0xff]  ;;  %v2888_v23 = vld [vmem:[#allocation5 + $0x70] sm:$0xff]  ;;  %v2500_v29 = vpack.c.bf16 %v236_v17, %v235_v16  ;;  %s2807_s11 = smov 112   ;;  %vm2808_vm8 = vmmov 0   ;;  %s2810_s12 = smov 72  }
  0x2c   :  { %2650 = vrot.lane.b32.xlu0 %v2649_v14, %s2798_s1  ;;  %2493 = vmatprep.subr.bf16.mxu1 %v2862_v15  ;;  %v237_v24 = vld [vmem:[#allocation5 + $0x30] sm:$0xff]  ;;  %v238_v25 = vld [vmem:[#allocation5 + $0x38] sm:$0xff]  ;;  %vm2985_vm4 = vmpackc.low %vm1087_vm2, %vm2802_vm3  ;;  %s2811_s13 = smov 80   ;;  %s2812_s14 = smov 16   ;;  %vm1826_vm9 = vcmask 64512  }
  0x2d   :  { %2657 = vrot.lane.b32.xlu1 %v2656_v11, %s2798_s1  ;;  %2495 = vmatpush3.bf16.msra.mxu1 %v2862_v15  ;;  %v2895_v26 = vld [vmem:[#allocation5 + $0x78] sm:$0xff]  ;;  %v2666_v27 = vpack.i.bf16 %v238_v25, %v237_v24  ;;  %v2504_v30 = vpack.c.bf16 %v238_v25, %v237_v24  ;;  %s2813_s15 = smov [#allocation7]  }
  0x2e   :  { %2491 = vmatpush3.bf16.msra.mxu0 %v2488_v8  ;;  %2497 = vmatprep.subr.bf16.mxu1 %v2902_v28  ;;  %s1927_s16 = sshll.u32 %s2813_s15, 4  ;;  %s1928_s16 = int_to_ptr.vmem [resolvable:$true] %s1927_s16 }
  0x2f   :  { %s2765_s17 = scalar_lea.vmem %s1928_s16, 128  ;;  %p2770_p3 = scmp.lt.s32.totalorder %s1928_s16, %s1928_s16 }
  0x30   :  { %55 = vperm.xlu0 %2654, %v2855_v6   ;;  %p2766_p2 = scmp.ne.s32.totalorder %s1928_s16, %s2765_s17  ;;  %p2771_p4 = scmp.lt.s32.totalorder %s2765_s17, %s2765_s17 }
  0x31   :  { %2214 = vmatmul.mubr.msk.f32.vlgmr.msra.gmra.mrb[0].mxu0 %vm93_vm0, %v2857_v7  ;;  %65 = vperm.xlu1 %2655, %v2866_v18  }
  0x32   :  { %2216 = vmatprep.mubr.msk.f32.mxu0 %vm93_vm0, %v2866_v18  ;;  %2499 = vmatpush3.bf16.msra.mxu1 %v2902_v28  ;;  %p2772_p5 = por %p2771_p4, %p2770_p3 }
  0x33   :  { %2501 = vmatprep.subr.bf16.mxu1 %v2500_v29 }
  0x34   :  { %70 = vperm.xlu0 %2654, %v2875_v20   ;;  %p2773_p6 = pnand %p2772_p5, %p2766_p2 }
  0x35   :  { %2217 = vmatmul.mubr.msk.f32.gmra.mrb[2].mxu0 %vm93_vm0, %v2875_v20  ;;  %2662 = vrot.lane.b32.xlu1 %v2661_v19, %s2798_s1 }
  0x36   :  { %2219 = vmatprep.mubr.msk.f32.mxu0 %vm93_vm0, %v2878_v21  ;;  %2503 = vmatpush3.bf16.msra.mxu1 %v2500_v29 }
  0x37   :  { %2505 = vmatprep.subr.bf16.mxu1 %v2504_v30 }
  0x38   :  { %75 = vperm.xlu0 %2654, %v2878_v21  }
  0x39   :  { %2220 = vmatmul.mubr.msk.f32.gmra.mrb[4].mxu0 %vm93_vm0, %v2885_v22  ;;  %80 = vperm.xlu1 %2655, %v2885_v22  }
  0x3a   :  { %2222 = vmatprep.mubr.msk.f32.mxu0 %vm93_vm0, %v2888_v23  ;;  %2507 = vmatpush3.bf16.msra.mxu1 %v2504_v30 }
  0x3c   :  { %2667 = vrot.lane.b32.xlu0 %v2666_v27, %s2798_s1 }
  0x3d   :  { %2223 = vmatmul.mubr.msk.f32.gmra.mrb[6].mxu0 %vm93_vm0, %v2895_v26  ;;  %85 = vperm.xlu1 %2655, %v2888_v23  }
  0x40   :  { %2672 = vrot.lane.b32.xlu0 %v2649_v14, %s2799_s6 }
  0x41   :  { %90 = vperm.xlu1 %2655, %v2895_v26  }
  0x44   :  { %2677 = vrot.lane.b32.xlu0 %v2649_v14, %s2800_s7 }
  0x45   :  { %2682 = vrot.lane.b32.xlu1 %v2656_v11, %s2799_s6 }
  0x48   :  { %2687 = vrot.lane.b32.xlu0 %v2656_v11, %s2800_s7 }
  0x49   :  { %2692 = vrot.lane.b32.xlu1 %v2661_v19, %s2799_s6 }
  0x4c   :  { %2697 = vrot.lane.b32.xlu0 %v2661_v19, %s2800_s7 }
  0x4d   :  { %2702 = vrot.lane.b32.xlu1 %v2666_v27, %s2799_s6 }
  0x50   :  { %2707 = vrot.lane.b32.xlu0 %v2666_v27, %s2800_s7 }
  0x51   :  { %788 = vrot.lane.b32.xlu1 %v2855_v6, %s2801_s8 }
  0x54   :  { %790 = vrot.lane.b32.xlu0 %v2857_v7, %s2801_s8 }
  0x55   :  { %792 = vrot.lane.b32.xlu1 %v2866_v18, %s2801_s8 }
  0x58   :  { %794 = vrot.lane.b32.xlu0 %v2875_v20, %s2801_s8 }
  0x59   :  { %796 = vrot.lane.b32.xlu1 %v2878_v21, %s2801_s8 }
  0x5c   :  { %798 = vrot.lane.b32.xlu0 %v2885_v22, %s2801_s8 }
  0x5d   :  { %800 = vrot.lane.b32.xlu1 %v2888_v23, %s2801_s8 }
  0x60   :  { %802 = vrot.lane.b32.xlu0 %v2895_v26, %s2801_s8 }
  0x9e   :  { %v2651_v31 = vpop.permute.xlu0 %2650 }
  0x9f   :  { %v2653_v32 = vunpack.i.h.bf16 %v2651_v31  ;;  %v2652_v33 = vunpack.i.l.bf16 %v2651_v31 }
  0xa1   :  { %v2911_v34 = vpack.c.bf16 %v2653_v32, %v2652_v33 }
  0xa3   :  { %2509 = vmatprep.subr.bf16.mxu0 %v2911_v34 }
  0xa4   :  { %2511 = vmatpush3.bf16.msra.mxu0 %v2911_v34 }
  0xa8   :  { %v61_v35 = vpop.permute.xlu1 %60 }
  0xac   :  { %v2658_v36 = vpop.permute.xlu1 %2657 }
  0xad   :  { %v2660_v37 = vunpack.i.h.bf16 %v2658_v36  ;;  %v2659_v38 = vunpack.i.l.bf16 %v2658_v36 }
  0xaf   :  { %v2919_v39 = vpack.c.bf16 %v2660_v37, %v2659_v38  ;;  %v56_v41 = vpop.permute.xlu0 %55 }
  0xb0   :  { %v66_v40 = vpop.permute.xlu1 %65 }
  0xb1   :  { %2513 = vmatprep.subr.bf16.mxu0 %v2919_v39 }
  0xb2   :  { %2515 = vmatpush3.bf16.msra.mxu0 %v2919_v39 }
  0xb3   :  { %v71_v45 = vpop.permute.xlu0 %70 }
  0xb4   :  { %v2663_v42 = vpop.permute.xlu1 %2662 }
  0xb5   :  { %v2665_v43 = vunpack.i.h.bf16 %v2663_v42  ;;  %v2664_v44 = vunpack.i.l.bf16 %v2663_v42 }
  0xb7   :  { %v2516_v46 = vpack.c.bf16 %v2665_v43, %v2664_v44  ;;  %v76_v47 = vpop.permute.xlu0 %75 }
  0xb8   :  { %v81_v60 = vpop.permute.xlu1 %80 }
  0xb9   :  { %2517 = vmatprep.subr.bf16.mxu0 %v2516_v46 }
  0xba   :  { %2519 = vmatpush3.bf16.msra.mxu0 %v2516_v46 }
  0xbb   :  { %v2668_v48 = vpop.permute.xlu0 %2667 }
  0xbc   :  { %v2670_v49 = vunpack.i.h.bf16 %v2668_v48  ;;  %v2669_v50 = vunpack.i.l.bf16 %v2668_v48  ;;  %v2935_v61 = vpop.permute.xlu1 %85 }
  0xbe   :  { %v2520_v51 = vpack.c.bf16 %v2670_v49, %v2669_v50 }
  0xbf   :  { %v2673_v52 = vpop.permute.xlu0 %2672 }
  0xc0   :  { %v2675_v53 = vunpack.i.h.bf16 %v2673_v52  ;;  %v2674_v54 = vunpack.i.l.bf16 %v2673_v52  ;;  %2521 = vmatprep.subr.bf16.mxu0 %v2520_v51  ;;  %v91_v62 = vpop.permute.xlu1 %90 }
  0xc1   :  { %2523 = vmatpush3.bf16.msra.mxu0 %v2520_v51 }
  0xc2   :  { %v2524_v55 = vpack.c.bf16 %v2675_v53, %v2674_v54 }
  0xc3   :  { %v2678_v56 = vpop.permute.xlu0 %2677 }
  0xc4   :  { %v2680_v57 = vunpack.i.h.bf16 %v2678_v56  ;;  %v2679_v58 = vunpack.i.l.bf16 %v2678_v56  ;;  %2525 = vmatprep.subr.bf16.mxu1 %v2524_v55  ;;  %v2683_v63 = vpop.permute.xlu1 %2682 }
  0xc5   :  { %v2685_v8 = vunpack.i.h.bf16 %v2683_v63  ;;  %v2684_v11 = vunpack.i.l.bf16 %v2683_v63 }
  0xc6   :  { %v2540_v59 = vpack.c.bf16 %v2680_v57, %v2679_v58 }
  0xc7   :  { %v2688_v0 = vpop.permute.xlu0 %2687  ;;  %v2528_v36 = vpack.c.bf16 %v2685_v8, %v2684_v11 }
  0xc8   :  { %2541 = vmatprep.subr.bf16.mxu0 %v2540_v59  ;;  %v2693_v2 = vpop.permute.xlu1 %2692  ;;  %v2690_v12 = vunpack.i.h.bf16 %v2688_v0  ;;  %v2689_v13 = vunpack.i.l.bf16 %v2688_v0 }
  0xc9   :  { %v2695_v24 = vunpack.i.h.bf16 %v2693_v2  ;;  %v2694_v25 = vunpack.i.l.bf16 %v2693_v2 }
  0xca   :  { %v2544_v37 = vpack.c.bf16 %v2690_v12, %v2689_v13 }
  0xcb   :  { %v2698_v9 = vpop.permute.xlu0 %2697 }
  0xcc   :  { %v2700_v30 = vunpack.i.h.bf16 %v2698_v9  ;;  %v2699_v31 = vunpack.i.l.bf16 %v2698_v9  ;;  %v2703_v32 = vpop.permute.xlu1 %2702 }
  0xcd   :  { %v2704_v50 = vunpack.i.l.bf16 %v2703_v32 }
  0xce   :  { %v2548_v49 = vpack.c.bf16 %v2700_v30, %v2699_v31 }
  0xcf   :  { %v2708_v42 = vpop.permute.xlu0 %2707 }
  0xd0   :  { %v2710_v53 = vunpack.i.h.bf16 %v2708_v42  ;;  %v2709_v54 = vunpack.i.l.bf16 %v2708_v42 }
 0x104   :  { %v2215_v1 = vpop.f32.mrb[0].mxu0 }
 0x105   :  { %v182_v3 = vadd.f32 %v2215_v1, %v61_v35  ;;  %v176_v4 = vpop.f32.mrb[1].mxu0  ;;  %v2552_v1 = vpack.c.bf16 %v2710_v53, %v2709_v54 }
 0x106   :  { %v177_v5 = vadd.f32 %v176_v4, %v56_v41  ;;  %v925_v4 = vld [vmem:[#allocation5 + $0x80] sm:$0xff] }
 0x107   :  { %v216_v10 = vmul.f32 0.01, %v182_v3 }
 0x108   :  { %v215_v14 = vmul.f32 0.01, %v177_v5  ;;  %v2218_v16 = vpop.f32.mrb[2].mxu0 }
 0x109   :  { %v192_v17 = vadd.f32 %v2218_v16, %v71_v45  ;;  %v186_v19 = vpop.f32.mrb[3].mxu0  ;;  %v2939_v33 = vmax.f32 %v182_v3, %v216_v10  ;;  %v2705_v45 = vunpack.i.h.bf16 %v2703_v32  ;;  %v789_v3 = vpop.permute.xlu1 %788 }
 0x10a   :  { %v2937_v27 = vmax.f32 %v177_v5, %v215_v14  ;;  %v187_v29 = vadd.f32 %v186_v19, %v66_v40  ;;  %v2532_v40 = vpack.c.bf16 %v2695_v24, %v2694_v25 }
 0x10b   :  { %v218_v35 = vmul.f32 0.01, %v192_v17  ;;  %v2536_v0 = vpack.c.bf16 %v2705_v45, %v2704_v50 }
 0x10c   :  { %v217_v38 = vmul.f32 0.01, %v187_v29  ;;  %v2221_v41 = vpop.f32.mrb[4].mxu0  ;;  %2241 = vmatprep.mubr.msk.f32.mxu1 %vm239_vm1, %v2937_v27  ;;  %2269 = vmatprep.mubr.msk.f32.mxu0 %vm239_vm1, %v2937_v27 }
 0x10d   :  { %v202_v43 = vadd.f32 %v2221_v41, %v81_v60  ;;  %v196_v44 = vpop.f32.mrb[5].mxu0  ;;  %2242 = vmatmul.mubr.msk.f32.vlgmr.msra.gmra.mrb[0].mxu1 %vm239_vm1, %v2939_v33  ;;  %2270 = vmatmul.mubr.msk.f32.vlgmr.msra.gmra.mrb[8].mxu0 %vm239_vm1, %v2939_v33  ;;  %v226_v51 = vmax.f32 %v192_v17, %v218_v35 }
 0x10e   :  { %v225_v46 = vmax.f32 %v187_v29, %v217_v38  ;;  %v197_v48 = vadd.f32 %v196_v44, %v76_v47  ;;  %2527 = vmatpush3.bf16.msra.mxu1 %v2524_v55  ;;  %2543 = vmatpush3.bf16.msra.mxu0 %v2540_v59 }
 0x10f   :  { %v220_v52 = vmul.f32 0.01, %v202_v43  ;;  %2529 = vmatprep.subr.bf16.mxu1 %v2528_v36  ;;  %2545 = vmatprep.subr.bf16.mxu0 %v2544_v37 }
 0x110   :  { %v219_v56 = vmul.f32 0.01, %v197_v48  ;;  %v2224_v57 = vpop.f32.mrb[6].mxu0  ;;  %2244 = vmatprep.mubr.msk.f32.mxu1 %vm239_vm1, %v225_v46  ;;  %2272 = vmatprep.mubr.msk.f32.mxu0 %vm239_vm1, %v225_v46 }
 0x111   :  { %v212_v58 = vadd.f32 %v2224_v57, %v91_v62  ;;  %v206_v60 = vpop.f32.mrb[7].mxu0  ;;  %2245 = vmatmul.mubr.msk.f32.gmra.mrb[2].mxu1 %vm239_vm1, %v226_v51  ;;  %2273 = vmatmul.mubr.msk.f32.gmra.mrb[10].mxu0 %vm239_vm1, %v226_v51  ;;  %v228_v59 = vmax.f32 %v202_v43, %v220_v52 }
 0x112   :  { %v227_v47 = vmax.f32 %v197_v48, %v219_v56  ;;  %v207_v55 = vadd.f32 %v206_v60, %v2935_v61  ;;  %2531 = vmatpush3.bf16.msra.mxu1 %v2528_v36  ;;  %2547 = vmatpush3.bf16.msra.mxu0 %v2544_v37 }
 0x113   :  { %v222_v63 = vmul.f32 0.01, %v212_v58  ;;  %2533 = vmatprep.subr.bf16.mxu1 %v2532_v40  ;;  %2549 = vmatprep.subr.bf16.mxu0 %v2548_v49 }
 0x114   :  { %v221_v2 = vmul.f32 0.01, %v207_v55  ;;  %2247 = vmatprep.mubr.msk.f32.mxu1 %vm239_vm1, %v227_v47  ;;  %2275 = vmatprep.mubr.msk.f32.mxu0 %vm239_vm1, %v227_v47 }
 0x115   :  { %2248 = vmatmul.mubr.msk.f32.gmra.mrb[4].mxu1 %vm239_vm1, %v228_v59  ;;  %2276 = vmatmul.mubr.msk.f32.gmra.mrb[12].mxu0 %vm239_vm1, %v228_v59  ;;  %v230_v61 = vmax.f32 %v212_v58, %v222_v63 }
 0x116   :  { %v229_v62 = vmax.f32 %v207_v55, %v221_v2  ;;  %2535 = vmatpush3.bf16.msra.mxu1 %v2532_v40  ;;  %2551 = vmatpush3.bf16.msra.mxu0 %v2548_v49 }
 0x117   :  { %2537 = vmatprep.subr.bf16.mxu1 %v2536_v0  ;;  %2553 = vmatprep.subr.bf16.mxu0 %v2552_v1 }
 0x118   :  { %2250 = vmatprep.mubr.msk.f32.mxu1 %vm239_vm1, %v229_v62  ;;  %2278 = vmatprep.mubr.msk.f32.mxu0 %vm239_vm1, %v229_v62 }
 0x119   :  { %2251 = vmatmul.mubr.msk.f32.gmra.mrb[6].mxu1 %vm239_vm1, %v230_v61  ;;  %2279 = vmatmul.mubr.msk.f32.gmra.mrb[14].mxu0 %vm239_vm1, %v230_v61 }
 0x11a   :  { %2539 = vmatpush3.bf16.msra.mxu1 %v2536_v0  ;;  %2297 = vmatprep.mubr.msk.f32.mxu1 %vm239_vm1, %v2937_v27 }
 0x11b   :  { %2555 = vmatpush3.bf16.msra.mxu0 %v2552_v1  ;;  %2325 = vmatprep.mubr.msk.f32.mxu0 %vm239_vm1, %v2937_v27 }
 0x11d   :  { %2298 = vmatmul.mubr.msk.f32.vlgmr.msra.gmra.mrb[8].mxu1 %vm239_vm1, %v2939_v33 }
 0x11e   :  { %2326 = vmatmul.mubr.msk.f32.vlgmr.msra.gmra.mrb[16].mxu0 %vm239_vm1, %v2939_v33  ;;  %2300 = vmatprep.mubr.msk.f32.mxu1 %vm239_vm1, %v225_v46 }
 0x11f   :  { %2328 = vmatprep.mubr.msk.f32.mxu0 %vm239_vm1, %v225_v46 }
 0x121   :  { %2301 = vmatmul.mubr.msk.f32.gmra.mrb[10].mxu1 %vm239_vm1, %v226_v51 }
 0x122   :  { %2329 = vmatmul.mubr.msk.f32.gmra.mrb[18].mxu0 %vm239_vm1, %v226_v51  ;;  %2303 = vmatprep.mubr.msk.f32.mxu1 %vm239_vm1, %v227_v47 }
 0x123   :  { %2331 = vmatprep.mubr.msk.f32.mxu0 %vm239_vm1, %v227_v47 }
 0x125   :  { %2304 = vmatmul.mubr.msk.f32.gmra.mrb[12].mxu1 %vm239_vm1, %v228_v59 }
 0x126   :  { %2332 = vmatmul.mubr.msk.f32.gmra.mrb[20].mxu0 %vm239_vm1, %v228_v59  ;;  %2306 = vmatprep.mubr.msk.f32.mxu1 %vm239_vm1, %v229_v62 }
 0x127   :  { %2334 = vmatprep.mubr.msk.f32.mxu0 %vm239_vm1, %v229_v62 }
 0x129   :  { %2307 = vmatmul.mubr.msk.f32.gmra.mrb[14].mxu1 %vm239_vm1, %v230_v61 }
 0x12a   :  { %2335 = vmatmul.mubr.msk.f32.gmra.mrb[22].mxu0 %vm239_vm1, %v230_v61  ;;  %2353 = vmatprep.mubr.msk.f32.mxu1 %vm239_vm1, %v789_v3 }
 0x12b   :  { %2381 = vmatprep.mubr.msk.f32.mxu0 %vm239_vm1, %v925_v4 }
 0x1e0   :  { %v2243_v5 = vpop.f32.mrb[0].mxu1  ;;  %v2271_v8 = vpop.f32.mrb[8].mxu0 }
 0x1e1   :  { %v507_v9 = vmax.f32 %v2243_v5, %v2271_v8  ;;  %v330_v10 = vpop.f32.mrb[1].mxu1  ;;  %v467_v11 = vpop.f32.mrb[9].mxu0 }
 0x1e2   :  { %v506_v12 = vmax.f32 %v330_v10, %v467_v11 }
 0x1e4   :  { %v2246_v13 = vpop.f32.mrb[2].mxu1  ;;  %v2274_v14 = vpop.f32.mrb[10].mxu0 }
 0x1e5   :  { %v509_v16 = vmax.f32 %v2246_v13, %v2274_v14  ;;  %v340_v17 = vpop.f32.mrb[3].mxu1  ;;  %v477_v19 = vpop.f32.mrb[11].mxu0 }
 0x1e6   :  { %v508_v24 = vmax.f32 %v340_v17, %v477_v19  ;;  %v791_v14 = vpop.permute.xlu0 %790  ;;  %v793_v17 = vpop.permute.xlu1 %792 }
 0x1e8   :  { %v2249_v25 = vpop.f32.mrb[4].mxu1  ;;  %v2277_v27 = vpop.f32.mrb[12].mxu0 }
 0x1e9   :  { %v511_v29 = vmax.f32 %v2249_v25, %v2277_v27  ;;  %v350_v30 = vpop.f32.mrb[5].mxu1  ;;  %v487_v31 = vpop.f32.mrb[13].mxu0  ;;  %v927_v27 = vld [vmem:[#allocation5 + $0x90] sm:$0xff] }
 0x1ea   :  { %v510_v32 = vmax.f32 %v350_v30, %v487_v31  ;;  %v795_v25 = vpop.permute.xlu0 %794  ;;  %v928_v30 = vld [vmem:[#allocation5 + $0x98] sm:$0xff]  ;;  %v929_v31 = vld [vmem:[#allocation5 + $0xa0] sm:$0xff] }
 0x1ec   :  { %v2252_v33 = vpop.f32.mrb[6].mxu1  ;;  %v2280_v35 = vpop.f32.mrb[14].mxu0 }
 0x1ed   :  { %v513_v36 = vmax.f32 %v2252_v33, %v2280_v35  ;;  %v360_v37 = vpop.f32.mrb[7].mxu1  ;;  %v497_v38 = vpop.f32.mrb[15].mxu0  ;;  %v930_v33 = vld [vmem:[#allocation5 + $0xa8] sm:$0xff]  ;;  %v931_v35 = vld [vmem:[#allocation5 + $0xb0] sm:$0xff] }
 0x1ee   :  { %v512_v41 = vmax.f32 %v360_v37, %v497_v38  ;;  %v932_v37 = vld [vmem:[#allocation5 + $0xb8] sm:$0xff] }
 0x1f0   :  { %v2299_v42 = vpop.f32.mrb[8].mxu1 }
 0x1f1   :  { %v644_v43 = vmax.f32 %v507_v9, %v2299_v42  ;;  %v2327_v44 = vpop.f32.mrb[16].mxu0  ;;  %v604_v40 = vpop.f32.mrb[9].mxu1 }
 0x1f2   :  { %v643_v45 = vmax.f32 %v506_v12, %v604_v40  ;;  %v741_v46 = vpop.f32.mrb[17].mxu0 }
 0x1f3   :  { %v781_v48 = vmax.f32 %v644_v43, %v2327_v44 }
 0x1f4   :  { %v780_v49 = vmax.f32 %v643_v45, %v741_v46  ;;  %v2302_v50 = vpop.f32.mrb[10].mxu1 }
 0x1f5   :  { %v646_v51 = vmax.f32 %v509_v16, %v2302_v50  ;;  %v2330_v52 = vpop.f32.mrb[18].mxu0  ;;  %v614_v53 = vpop.f32.mrb[11].mxu1 }
 0x1f6   :  { %v2556_v54 = vpack.c.bf16 %v781_v48, %v780_v49  ;;  %v645_v56 = vmax.f32 %v508_v24, %v614_v53  ;;  %v751_v57 = vpop.f32.mrb[19].mxu0  ;;  %v926_v24 = vld [vmem:[#allocation5 + $0x88] sm:$0xff] }
 0x1f7   :  { %v783_v58 = vmax.f32 %v646_v51, %v2330_v52 }
 0x1f8   :  { %v782_v60 = vmax.f32 %v645_v56, %v751_v57  ;;  %v2305_v47 = vpop.f32.mrb[12].mxu1  ;;  %2557 = vmatprep.subr.bf16.mxu1 %v2556_v54  ;;  %2573 = vmatprep.subr.bf16.mxu0 %v2556_v54 }
 0x1f9   :  { %v648_v55 = vmax.f32 %v511_v29, %v2305_v47  ;;  %v2333_v59 = vpop.f32.mrb[20].mxu0  ;;  %v624_v63 = vpop.f32.mrb[13].mxu1  ;;  %2559 = vmatpush3.bf16.msra.mxu1 %v2556_v54  ;;  %2575 = vmatpush3.bf16.msra.mxu0 %v2556_v54 }
 0x1fa   :  { %v2560_v0 = vpack.c.bf16 %v783_v58, %v782_v60  ;;  %v647_v1 = vmax.f32 %v510_v32, %v624_v63  ;;  %v761_v2 = vpop.f32.mrb[21].mxu0  ;;  %v797_v29 = vpop.permute.xlu1 %796 }
 0x1fb   :  { %v785_v62 = vmax.f32 %v648_v55, %v2333_v59  ;;  %v799_v32 = vpop.permute.xlu0 %798 }
 0x1fc   :  { %v784_v61 = vmax.f32 %v647_v1, %v761_v2  ;;  %v2308_v3 = vpop.f32.mrb[14].mxu1  ;;  %2561 = vmatprep.subr.bf16.mxu1 %v2560_v0  ;;  %2577 = vmatprep.subr.bf16.mxu0 %v2560_v0 }
 0x1fd   :  { %v650_v4 = vmax.f32 %v513_v36, %v2308_v3  ;;  %v2336_v5 = vpop.f32.mrb[22].mxu0  ;;  %v634_v8 = vpop.f32.mrb[15].mxu1  ;;  %2563 = vmatpush3.bf16.msra.mxu1 %v2560_v0  ;;  %2579 = vmatpush3.bf16.msra.mxu0 %v2560_v0 }
 0x1fe   :  { %v2564_v9 = vpack.c.bf16 %v785_v62, %v784_v61  ;;  %v649_v10 = vmax.f32 %v512_v41, %v634_v8  ;;  %v771_v11 = vpop.f32.mrb[23].mxu0  ;;  %v801_v36 = vpop.permute.xlu1 %800 }
 0x1ff   :  { %v787_v12 = vmax.f32 %v650_v4, %v2336_v5  ;;  %v803_v38 = vpop.permute.xlu0 %802 }
 0x200   :  { %v786_v13 = vmax.f32 %v649_v10, %v771_v11  ;;  %2565 = vmatprep.subr.bf16.mxu1 %v2564_v9  ;;  %2581 = vmatprep.subr.bf16.mxu0 %v2564_v9 }
 0x201   :  { %2567 = vmatpush3.bf16.msra.mxu1 %v2564_v9  ;;  %2583 = vmatpush3.bf16.msra.mxu0 %v2564_v9 }
 0x202   :  { %v2568_v16 = vpack.c.bf16 %v787_v12, %v786_v13 }
 0x204   :  { %2569 = vmatprep.subr.bf16.mxu1 %v2568_v16  ;;  %2585 = vmatprep.subr.bf16.mxu0 %v2568_v16 }
 0x205   :  { %2571 = vmatpush3.bf16.msra.mxu1 %v2568_v16  ;;  %2587 = vmatpush3.bf16.msra.mxu0 %v2568_v16 }
 0x206   :  { %2589 = vmatprep.subr.bf16.mxu1 %v2911_v34  ;;  %2610 = vmatprep.subr.msk.bf16.mxu0 %vm2985_vm4, %v2862_v15 }
 0x208   :  { %2382 = vmatmul.mubr.msk.f32.vlgmr.msra.gmra.mrb[24].mxu0 %vm239_vm1, %v926_v24  ;;  %2354 = vmatmul.mubr.msk.f32.vlgmr.msra.gmra.mrb[16].mxu1 %vm239_vm1, %v791_v14 }
 0x209   :  { %2591 = vmatpush3.bf16.msra.mxu1 %v2911_v34  ;;  %2613 = vmatpush3.bf16.msk.msra.mxu0 %vm2985_vm4, %v2862_v15 }
 0x20a   :  { %2594 = vmatprep.subr.msk.bf16.mxu1 %vm2985_vm4, %v2919_v39  ;;  %2616 = vmatprep.subr.msk.bf16.mxu0 %vm2985_vm4, %v2911_v34 }
 0x20b   :  { %2384 = vmatprep.mubr.msk.f32.mxu0 %vm239_vm1, %v927_v27  ;;  %2356 = vmatprep.mubr.msk.f32.mxu1 %vm239_vm1, %v793_v17 }
 0x20c   :  { %2385 = vmatmul.mubr.msk.f32.gmra.mrb[26].mxu0 %vm239_vm1, %v928_v30  ;;  %2357 = vmatmul.mubr.msk.f32.gmra.mrb[18].mxu1 %vm239_vm1, %v795_v25 }
 0x20d   :  { %2597 = vmatpush3.bf16.msk.msra.mxu1 %vm2985_vm4, %v2919_v39  ;;  %2387 = vmatprep.mubr.msk.f32.mxu0 %vm239_vm1, %v929_v31  ;;  %v2803_v39 = vmov 104  }
 0x20e   :  { %2359 = vmatprep.mubr.msk.f32.mxu1 %vm239_vm1, %v797_v29  ;;  %2599 = vmatprep.subr.bf16.mxu1 %v2862_v15 }
 0x20f   :  { %2711 = vset.pattern.permute.xlu1 %v2803_v39  ;;  %2712 = vset.pattern.permute.xlu0 %v2803_v39 }
 0x210   :  { %2388 = vmatmul.mubr.msk.f32.gmra.mrb[28].mxu0 %vm239_vm1, %v930_v33  ;;  %2360 = vmatmul.mubr.msk.f32.gmra.mrb[20].mxu1 %vm239_vm1, %v799_v32 }
 0x211   :  { %2390 = vmatprep.mubr.msk.f32.mxu0 %vm239_vm1, %v931_v35  ;;  %2362 = vmatprep.mubr.msk.f32.mxu1 %vm239_vm1, %v801_v36 }
 0x212   :  { %1327 = vperm.xlu1 %2711, %v2855_v6   ;;  %1331 = vperm.xlu0 %2712, %v2857_v7  }
 0x214   :  { %2391 = vmatmul.mubr.msk.f32.gmra.mrb[30].mxu0 %vm239_vm1, %v932_v37  ;;  %2363 = vmatmul.mubr.msk.f32.gmra.mrb[22].mxu1 %vm239_vm1, %v803_v38 }
 0x216   :  { %1335 = vperm.xlu1 %2711, %v2866_v18   ;;  %1343 = vperm.xlu0 %2712, %v2878_v21  }
 0x21a   :  { %1339 = vperm.xlu1 %2711, %v2875_v20   ;;  %1351 = vperm.xlu0 %2712, %v2888_v23  }
 0x21e   :  { %1347 = vperm.xlu1 %2711, %v2885_v22  }
 0x222   :  { %1355 = vperm.xlu1 %2711, %v2895_v26  }
 0x291   :  { %v1328_v48 = vpop.permute.xlu1 %1327  ;;  %v1332_v50 = vpop.permute.xlu0 %1331 }
 0x295   :  { %v1336_v49 = vpop.permute.xlu1 %1335  ;;  %v1344_v1 = vpop.permute.xlu0 %1343 }
 0x299   :  { %v1340_v51 = vpop.permute.xlu1 %1339  ;;  %v1352_v16 = vpop.permute.xlu0 %1351 }
 0x29d   :  { %v1348_v59 = vpop.permute.xlu1 %1347 }
 0x2a1   :  { %v1356_v12 = vpop.permute.xlu1 %1355 }
 0x2db   :  { %v2383_v41 = vpop.f32.mrb[24].mxu0  ;;  %v2355_v42 = vpop.f32.mrb[16].mxu1 }
 0x2dc   :  { %v1023_v43 = vpop.f32.mrb[25].mxu0  ;;  %v886_v44 = vpop.f32.mrb[17].mxu1 }
 0x2dd   :  { %2401 = vmatprep.mubr.msk.f32.mxu1 %vm1062_vm5, %v1023_v43 }
 0x2de   :  { %2402 = vmatmul.mubr.msk.f32.vlgmr.msra.gmra.mrb[24].mxu1 %vm1062_vm5, %v2383_v41 }
 0x2df   :  { %v2386_v6 = vpop.f32.mrb[26].mxu0  ;;  %2601 = vmatpush3.bf16.msra.mxu1 %v2862_v15  ;;  %v2358_v7 = vpop.f32.mrb[18].mxu1 }
 0x2e0   :  { %v1033_v18 = vpop.f32.mrb[27].mxu0  ;;  %2604 = vmatprep.subr.msk.bf16.mxu1 %vm2985_vm4, %v2902_v28  ;;  %v896_v20 = vpop.f32.mrb[19].mxu1 }
 0x2e1   :  { %2404 = vmatprep.mubr.msk.f32.mxu1 %vm1062_vm5, %v1033_v18 }
 0x2e2   :  { %2405 = vmatmul.mubr.msk.f32.gmra.mrb[26].mxu1 %vm1062_vm5, %v2386_v6 }
 0x2e3   :  { %v2389_v21 = vpop.f32.mrb[28].mxu0  ;;  %2607 = vmatpush3.bf16.msk.msra.mxu1 %vm2985_vm4, %v2902_v28  ;;  %v2361_v22 = vpop.f32.mrb[20].mxu1  ;;  %v1629_v28 = vld [vmem:[#allocation5 + $0x80] sm:$0x7f] }
 0x2e4   :  { %v1043_v23 = vpop.f32.mrb[29].mxu0  ;;  %v906_v26 = vpop.f32.mrb[21].mxu1  ;;  %1631 = vrot.lane.b32.xlu0 %v1629_v28, %s2799_s6 }
 0x2e5   :  { %2407 = vmatprep.mubr.msk.f32.mxu1 %vm1062_vm5, %v1043_v23 }
 0x2e6   :  { %2408 = vmatmul.mubr.msk.f32.gmra.mrb[28].mxu1 %vm1062_vm5, %v2389_v21 }
 0x2e7   :  { %v2392_v15 = vpop.f32.mrb[30].mxu0  ;;  %v2364_v40 = vpop.f32.mrb[22].mxu1 }
 0x2e8   :  { %v1053_v45 = vpop.f32.mrb[31].mxu0  ;;  %v916_v46 = vpop.f32.mrb[23].mxu1 }
 0x2e9   :  { %2410 = vmatprep.mubr.msk.f32.mxu1 %vm1062_vm5, %v1053_v45 }
 0x2ea   :  { %2411 = vmatmul.mubr.msk.f32.gmra.mrb[30].mxu1 %vm1062_vm5, %v2392_v15 }
 0x2eb   :  { %2421 = vmatprep.mubr.msk.f32.mxu1 %vm1062_vm5, %v886_v44 }
 0x2ee   :  { %2422 = vmatmul.mubr.msk.f32.vlgmr.msra.gmra.mrb[24].mxu1 %vm1062_vm5, %v2355_v42 }
 0x2ef   :  { %2424 = vmatprep.mubr.msk.f32.mxu1 %vm1062_vm5, %v896_v20 }
 0x2f2   :  { %2425 = vmatmul.mubr.msk.f32.gmra.mrb[26].mxu1 %vm1062_vm5, %v2358_v7 }
 0x2f3   :  { %2427 = vmatprep.mubr.msk.f32.mxu1 %vm1062_vm5, %v906_v26 }
 0x2f6   :  { %2428 = vmatmul.mubr.msk.f32.gmra.mrb[28].mxu1 %vm1062_vm5, %v2361_v22 }
 0x2f7   :  { %2430 = vmatprep.mubr.msk.f32.mxu1 %vm1062_vm5, %v916_v46 }
 0x2fa   :  { %2431 = vmatmul.mubr.msk.f32.gmra.mrb[30].mxu1 %vm1062_vm5, %v2364_v40 }
 0x356   :  { %v1632_v32 = vpop.permute.xlu0 %1631 }
 0x357   :  { %2465 = vmatprep.subr.msk.mxu1 %vm1087_vm2, %v1632_v32 }
 0x358   :  { %2466 = vmatpush3.msk.msra.mxu1 %vm1087_vm2, %v1632_v32 }
 0x3c1   :  { %v2423_v52 = vpop.f32.mrb[24].mxu1 }
 0x3c2   :  { %v1359_v53 = vadd.f32 %v2423_v52, %v1332_v50  ;;  %v1287_v54 = vpop.f32.mrb[25].mxu1 }
 0x3c3   :  { %v1358_v56 = vadd.f32 %v1328_v48, %v1287_v54 }
 0x3c4   :  { %v1367_v57 = vmul.f32 0.01, %v1359_v53 }
 0x3c5   :  { %v1366_v58 = vmul.f32 0.01, %v1358_v56  ;;  %v2426_v60 = vpop.f32.mrb[26].mxu1 }
 0x3c6   :  { %v1361_v47 = vadd.f32 %v2426_v60, %v1340_v51  ;;  %v1297_v55 = vpop.f32.mrb[27].mxu1  ;;  %v1375_v2 = vmax.f32 %v1359_v53, %v1367_v57  ;;  %v2805_v51 = vmov 0.0  }
 0x3c7   :  { %v1374_v63 = vmax.f32 %v1358_v56, %v1366_v58  ;;  %v1360_v0 = vadd.f32 %v1336_v49, %v1297_v55  ;;  %v2809_v56 = vmov 0   ;;  %v2720_v55 = vld [vmem:[#allocation5 + $0x40] sm:$0xff] }
 0x3c8   :  { %v1369_v62 = vmul.f32 0.01, %v1361_v47  ;;  %2713 = vset.pattern.permute.xlu0 %v2809_v56 }
 0x3c9   :  { %v1368_v61 = vmul.f32 0.01, %v1360_v0  ;;  %v2429_v3 = vpop.f32.mrb[28].mxu1  ;;  %2437 = vmatprep.mubr.msk.f32.mxu0 %vm1382_vm6, %v1374_v63 }
 0x3ca   :  { %v1363_v4 = vadd.f32 %v2429_v3, %v1348_v59  ;;  %v1307_v5 = vpop.f32.mrb[29].mxu1  ;;  %2438 = vmatmul.mubr.msk.f32.vlgmr.msra.gmra.mrb[32].mxu0 %vm1382_vm6, %v1375_v2  ;;  %v1377_v10 = vmax.f32 %v1361_v47, %v1369_v62  ;;  %v2038_v47 = vld [vmem:[#allocation5 + $0x40] ss:$0 sm:$0xff] }
 0x3cb   :  { %v1376_v8 = vmax.f32 %v1360_v0, %v1368_v61  ;;  %v1362_v9 = vadd.f32 %v1344_v1, %v1307_v5  ;;  %2619 = vmatpush3.bf16.msk.msra.mxu0 %vm2985_vm4, %v2911_v34  ;;  %v2039_v59 = vld [vmem:[#allocation5 + $0xc0] ss:$0 sm:$0xff] }
 0x3cc   :  { %v1371_v11 = vmul.f32 0.01, %v1363_v4  ;;  %2479 = vmatprep.subr.mxu0 %v2805_v51 }
 0x3cd   :  { %v1370_v13 = vmul.f32 0.01, %v1362_v9  ;;  %v2432_v14 = vpop.f32.mrb[30].mxu1  ;;  %2440 = vmatprep.mubr.msk.f32.mxu0 %vm1382_vm6, %v1376_v8 }
 0x3ce   :  { %v1365_v17 = vadd.f32 %v2432_v14, %v1356_v12  ;;  %v1317_v24 = vpop.f32.mrb[31].mxu1  ;;  %2441 = vmatmul.mubr.msk.f32.gmra.mrb[34].mxu0 %vm1382_vm6, %v1377_v10  ;;  %v1379_v29 = vmax.f32 %v1363_v4, %v1371_v11 }
 0x3cf   :  { %v1378_v25 = vmax.f32 %v1362_v9, %v1370_v13  ;;  %v1364_v27 = vadd.f32 %v1352_v16, %v1317_v24 }
 0x3d0   :  { %v1373_v30 = vmul.f32 0.01, %v1365_v17 }
 0x3d1   :  { %v1372_v31 = vmul.f32 0.01, %v1364_v27  ;;  %2443 = vmatprep.mubr.msk.f32.mxu0 %vm1382_vm6, %v1378_v25 }
 0x3d2   :  { %2444 = vmatmul.mubr.msk.f32.gmra.mrb[36].mxu0 %vm1382_vm6, %v1379_v29  ;;  %v1381_v19 = vmax.f32 %v1365_v17, %v1373_v30 }
 0x3d3   :  { %v1380_v34 = vmax.f32 %v1364_v27, %v1372_v31 }
 0x3d5   :  { %2446 = vmatprep.mubr.msk.f32.mxu0 %vm1382_vm6, %v1380_v34 }
 0x3d6   :  { %2447 = vmatmul.mubr.msk.f32.gmra.mrb[38].mxu0 %vm1382_vm6, %v1381_v19 }
 0x3d7   :  { %2453 = vmatprep.mubr.msk.f32.mxu0 %vm1382_vm6, %v1374_v63  ;;  %v44_v63 = vld [vmem:[#allocation2 + $0x20] sm:$0xff] }
 0x3da   :  { %2454 = vmatmul.mubr.msk.f32.vlgmr.msra.gmra.mrb[40].mxu0 %vm1382_vm6, %v1375_v2 }
 0x3db   :  { %2456 = vmatprep.mubr.msk.f32.mxu0 %vm1382_vm6, %v1376_v8 }
 0x3de   :  { %2457 = vmatmul.mubr.msk.f32.gmra.mrb[42].mxu0 %vm1382_vm6, %v1377_v10 }
 0x3df   :  { %2459 = vmatprep.mubr.msk.f32.mxu0 %vm1382_vm6, %v1378_v25 }
 0x3e2   :  { %2460 = vmatmul.mubr.msk.f32.gmra.mrb[44].mxu0 %vm1382_vm6, %v1379_v29 }
 0x3e3   :  { %2462 = vmatprep.mubr.msk.f32.mxu0 %vm1382_vm6, %v1380_v34 }
 0x3e6   :  { %2463 = vmatmul.mubr.msk.f32.gmra.mrb[46].mxu0 %vm1382_vm6, %v1381_v19 }
 0x3e7   :  { %2481 = vmatprep.mubr.msk.f32.mxu0 %vm2808_vm8, %v2805_v51 }
 0x49d   :  { %v2439_v33 = vpop.f32.mrb[32].mxu0 }
 0x49e   :  { %v1475_v35 = vpop.f32.mrb[33].mxu0 }
 0x4a1   :  { %v2442_v36 = vpop.f32.mrb[34].mxu0 }
 0x4a2   :  { %v1485_v37 = vpop.f32.mrb[35].mxu0 }
 0x4a5   :  { %v2445_v38 = vpop.f32.mrb[36].mxu0 }
 0x4a6   :  { %v1495_v39 = vpop.f32.mrb[37].mxu0 }
 0x4a9   :  { %v2448_v41 = vpop.f32.mrb[38].mxu0 }
 0x4aa   :  { %v1505_v42 = vpop.f32.mrb[39].mxu0 }
 0x4ad   :  { %v2455_v43 = vpop.f32.mrb[40].mxu0 }
 0x4ae   :  { %v1622_v44 = vmax.f32 %v2439_v33, %v2455_v43  ;;  %v1582_v6 = vpop.f32.mrb[41].mxu0 }
 0x4af   :  { %v1621_v7 = vmax.f32 %v1475_v35, %v1582_v6  ;;  %v1905_v35 = vlaneseq }
 0x4b1   :  { %v2458_v18 = vpop.f32.mrb[42].mxu0  ;;  %2467 = vmatprep.mubr.msk.f32.mxu1 %vm1633_vm7, %v1621_v7 }
 0x4b2   :  { %v1624_v20 = vmax.f32 %v2442_v36, %v2458_v18  ;;  %v1592_v21 = vpop.f32.mrb[43].mxu0  ;;  %2468 = vmatmul.mubr.msk.f32.vlgmr.msra.gmra.mrb[32].mxu1 %vm1633_vm7, %v1622_v44 }
 0x4b3   :  { %v1623_v22 = vmax.f32 %v1485_v37, %v1592_v21  ;;  %v1906_v37 = vand.u32 127, %v1905_v35 }
 0x4b5   :  { %v2461_v23 = vpop.f32.mrb[44].mxu0  ;;  %2470 = vmatprep.mubr.msk.f32.mxu1 %vm1633_vm7, %v1623_v22  ;;  %vm1914_vm10 = vcmp.eq.s32.totalorder %v1906_v37, 7  ;;  %vm1907_vm11 = vcmp.eq.s32.totalorder %v1906_v37, 6 }
 0x4b6   :  { %v1626_v26 = vmax.f32 %v2445_v38, %v2461_v23  ;;  %v1602_v15 = vpop.f32.mrb[45].mxu0  ;;  %2471 = vmatmul.mubr.msk.f32.gmra.mrb[34].mxu1 %vm1633_vm7, %v1624_v20 }
 0x4b7   :  { %v1625_v40 = vmax.f32 %v1495_v39, %v1602_v15 }
 0x4b9   :  { %v2464_v45 = vpop.f32.mrb[46].mxu0  ;;  %2473 = vmatprep.mubr.msk.f32.mxu1 %vm1633_vm7, %v1625_v40 }
 0x4ba   :  { %v1628_v46 = vmax.f32 %v2448_v41, %v2464_v45  ;;  %v1612_v28 = vpop.f32.mrb[47].mxu0  ;;  %2474 = vmatmul.mubr.msk.f32.gmra.mrb[36].mxu1 %vm1633_vm7, %v1626_v26 }
 0x4bb   :  { %v1627_v48 = vmax.f32 %v1505_v42, %v1612_v28 }
 0x4bd   :  { %2476 = vmatprep.mubr.msk.f32.mxu1 %vm1633_vm7, %v1627_v48 }
 0x4be   :  { %2477 = vmatmul.mubr.msk.f32.gmra.mrb[38].mxu1 %vm1633_vm7, %v1628_v46 }
 0x585   :  { %v2469_v49 = vpop.f32.mrb[32].mxu1 }
 0x586   :  { %1766 = vrot.lane.b32.xlu1 %v2469_v49, %s2804_s9  ;;  %v1726_v50 = vpop.f32.mrb[33].mxu1 }
 0x589   :  { %v2472_v52 = vpop.f32.mrb[34].mxu1 }
 0x58a   :  { %1776 = vrot.lane.b32.xlu1 %v2472_v52, %s2806_s10  ;;  %v1736_v53 = vpop.f32.mrb[35].mxu1 }
 0x58b   :  { %1771 = vrot.lane.b32.xlu0 %v1736_v53, %s2807_s11 }
 0x58d   :  { %v2475_v54 = vpop.f32.mrb[36].mxu1 }
 0x58e   :  { %1786 = vrot.lane.b32.xlu1 %v2475_v54, %s2801_s8  ;;  %v1746_v57 = vpop.f32.mrb[37].mxu1 }
 0x58f   :  { %1781 = vrot.lane.b32.xlu0 %v1746_v57, %s2798_s1 }
 0x591   :  { %v2478_v58 = vpop.f32.mrb[38].mxu1 }
 0x592   :  { %1796 = vrot.lane.b32.xlu1 %v2478_v58, %s2810_s12  ;;  %v1756_v60 = vpop.f32.mrb[39].mxu1 }
 0x593   :  { %1791 = vrot.lane.b32.xlu0 %v1756_v60, %s2811_s13 }
 0x596   :  { %1823 = vrot.lane.b32.xlu1 %v2720_v55, %s2795_s20 }
 0x597   :  { %1806 = vrot.lane.b32.xlu0 %v2038_v47, %s2812_s14 }
 0x59a   :  { %1901 = vrot.lane.b32.xlu1 %v2039_v59, %s2804_s9 }
 0x59b   :  { %1814 = vperm.xlu0 %2713, %v44_v63  }
 0x5f8   :  { %v1767_v0 = vpop.permute.xlu1 %1766 }
 0x5f9   :  { %v1769_v1 = vadd.f32 %v1767_v0, %v1726_v50 }
 0x5fc   :  { %v1777_v2 = vpop.permute.xlu1 %1776 }
 0x5fd   :  { %v1772_v62 = vpop.permute.xlu0 %1771 }
 0x5fe   :  { %v1774_v61 = vadd.f32 %v1772_v62, %v1769_v1 }
 0x600   :  { %v1787_v3 = vpop.permute.xlu1 %1786  ;;  %v1779_v4 = vadd.f32 %v1777_v2, %v1774_v61 }
 0x601   :  { %v1782_v5 = vpop.permute.xlu0 %1781 }
 0x602   :  { %v1784_v8 = vadd.f32 %v1782_v5, %v1779_v4 }
 0x604   :  { %v1797_v9 = vpop.permute.xlu1 %1796  ;;  %v1789_v10 = vadd.f32 %v1787_v3, %v1784_v8 }
 0x605   :  { %v1792_v11 = vpop.permute.xlu0 %1791 }
 0x606   :  { %v1794_v12 = vadd.f32 %v1792_v11, %v1789_v10 }
 0x608   :  { %v1824_v13 = vpop.permute.xlu1 %1823  ;;  %v1799_v14 = vadd.f32 %v1797_v9, %v1794_v12 }
 0x609   :  { %2480 = vmatpush3.msra.mxu0 %v1824_v13  ;;  %v1807_v16 = vpop.permute.xlu0 %1806 }
 0x60a   :  { %v1809_v17 = vadd.f32 %v1807_v16, %v1799_v14 }
 0x60c   :  { %2482 = vmatmul.mubr.msk.f32.vlgmr.msra.gmra.mrb[48].mxu0 %vm1826_vm9, %v1809_v17  ;;  %v1902_v29 = vpop.permute.xlu1 %1901 }
 0x61a   :  { %v1815_v24 = vpop.permute.xlu0 %1814 }
 0x61b   :  { %v1821_v25 = vmul.f32 %v2039_v59, %v1815_v24 }
 0x6df   :  { %v1896_v27 = vpop.f32.mrb[48].mxu0 }
 0x6e0   :  { %v1897_v30 = vadd.f32 %v1896_v27, %v1821_v25  ;;  %v2483_v31 = vpop.f32.mrb[49].mxu0 }
 0x6e2   :  { %v1904_v34 = vadd.f32 %v1902_v29, %v1897_v30 }
 0x6e4   :  { %v2041_v19 = vmul.f32 -1.442695, %v1904_v34 }
 0x6e6   :  { %2714 = vpow2.f32 %v2041_v19 }
 0x6e7   :  { %2716 = vtanh.f32 %v1904_v34 }
 0x6f0   :  { %v2715_v32 = vpop.eup %2714 }
 0x6f1   :  { %v1911_v33 = vadd.f32 1.0, %v2715_v32  ;;  %v2717_v36 = vpop.eup %2716 }
 0x6f2   :  { %v1916_v38 = vadd.f32 1.0, %v2717_v36 }
 0x6f3   :  { %2718 = vrcp.f32 %v1911_v33 }
 0x6f4   :  { %v1917_v41 = vsel %vm1914_vm10, %v1916_v38, 0.0 }
 0x6fd   :  { %v2719_v39 = vpop.eup %2718 }
 0x6fe   :  { %v1918_v42 = vsel %vm1907_vm11, %v2719_v39, %v1917_v41 }
 0x6ff   :  { %v1919_v43 = vadd.f32 %v1918_v42, %v1809_v17 }
 0x701   :  { %1920 = vst.msk [vmem:[#allocation7] sm:$0xff] %vm1826_vm9, %v1919_v43 }
 0x702   :  { %2776 = shalt.err (!%p2773_p6)
}
 0x703   :  { %s2777_s20 = scalar_lea.hbm %s3103_s2, 128 }
 0x704   :  { %p2778_p7 = scmp.ne.s32.totalorder %s3103_s2, %s2777_s20  ;;  %p2781_p8 = scmp.lt.u32.totalorder %s2777_s20, %s3103_s2 }
 0x706   :  { %p2783_p9 = pnand %p2781_p8, %p2778_p7 }
 0x708   :  { %2786 = shalt.err (!%p2783_p9)
}
 0x709   :  { %1930 = dma.vmem_to_hbm [thread:$0]  %s1928_s16, 128, %s3103_s2, [#allocation4]  }
 0x70a   :  { %2791 = dma.done.wait [#allocation4], 128  }
 0x70b   :  { %2792 = vsyncadd [#allocation4], 4294967168 }
 0x70c   :  { %1934 = vsyncpa [#allocation3], 1 }
 0x70d   :  { %1935 = vsyncpa [#allocation6], 1 }
 0x70e   :  { %1936 = vsyncpa [#allocation4], 1 }

</bundles_post_ra>
